<compile_context>
chip_gen: v5e
topology: v5e:2x2
jax: 0.10.0
libtpu: 0.0.40
codegen_flags: <defaults>
</compile_context>

<pallas_src>
import jax
import jax.numpy as jnp
from jax import lax
from jax.experimental import pallas as pl
from jax.experimental.pallas import tpu as pltpu

BN_EPS = 1e-5
LANE = 128


def _latent_linear_kernel(x_ref, w_ref, gb_ref, o_ref):
    # x_ref: (BBLK, n, c_in), w_ref: (BBLK, c_in, c_out_p), gb_ref: (BBLK, 2, c_out_p)
    # Linear, no bias: batched contraction on the MXU with f32 accumulation; the RHS is
    # already (c_in, c_out_p) so the lane-padded c_out is the dense minor dim.
    h = lax.dot_general(
        x_ref[...], w_ref[...],
        dimension_numbers=(((2,), (1,)), ((0,), (0,))),
        preferred_element_type=jnp.float32,
    )                                    # (BBLK, n, c_out_p) f32
    # ReLU(inplace=True) — output-equivalent to out-of-place relu.
    h = jnp.maximum(h, 0.0)

    # BatchNorm1d (training mode): per-feature batch mean + biased variance over axis=1.
    # Two-pass (centered) variance for numerical parity with PyTorch.
    n = h.shape[1]
    inv_n = jnp.float32(1.0 / n)
    mean = jnp.sum(h, axis=1, keepdims=True) * inv_n                   # (BBLK, 1, c_out_p)
    centered = h - mean
    var = jnp.sum(centered * centered, axis=1, keepdims=True) * inv_n  # biased variance
    inv_std = lax.rsqrt(var + BN_EPS)

    gamma = gb_ref[:, 0:1, :]            # (BBLK, 1, c_out_p)
    beta = gb_ref[:, 1:2, :]             # (BBLK, 1, c_out_p)
    # Fused affine epilogue: one multiply-add per element of the centered activation.
    o_ref[...] = (centered * (inv_std * gamma) + beta).astype(o_ref.dtype)


def _vmem_limit_bytes():
    """Generation-aware VMEM budget (~3/4 of physical capacity, capped for safety)."""
    try:
        cap = pltpu.get_tpu_info().vmem_capacity_bytes
    except Exception:
        cap = 64 * 1024 * 1024
    return int(min(cap * 3 // 4, 96 * 1024 * 1024))


def _pick_bblk(b, n, c_in, c_out_p, vmem_limit):
    """Instances per grid step: big enough to amortize per-step overhead, small enough
    for VMEM, and leaving >= 2 grid steps (when B >= 2) so both v7x TCs get work."""
    per_inst = 4 * (2 * (n * c_in + c_in * c_out_p + 2 * c_out_p + n * c_out_p)  # dbl-buffered I/O
                    + 2 * n * c_out_p)                                            # f32 intermediates
    max_by_vmem = max(1, vmem_limit // max(per_inst, 1))
    bblk = min(b, 32, max_by_vmem)
    if b >= 2:
        bblk = min(bblk, -(-b // 2))
    return max(1, bblk)


def prepare_latent_linear_params(weight, gamma, beta, *, use_bf16=False):
    """One-time parameter prep, hoisted out of the per-call hot path.

    weight: (B, c_out, c_in)  PyTorch nn.Linear layout
    gamma, beta: (B, c_out)   BatchNorm1d affine parameters
    Returns (w_t, gb, c_out):
      w_t: (B, c_in, c_out_p)  transposed + lane-padded MXU RHS (optionally bf16)
      gb:  (B, 2, c_out_p)     packed [gamma; beta] (f32)
    """
    b, c_out, c_in = weight.shape
    c_out_p = ((c_out + LANE - 1) // LANE) * LANE
    pad = c_out_p - c_out
    w_t = jnp.swapaxes(weight, 1, 2)                      # (B, c_in, c_out)
    if pad:
        w_t = jnp.pad(w_t, ((0, 0), (0, 0), (0, pad)))
        gamma = jnp.pad(gamma, ((0, 0), (0, pad)))
        beta = jnp.pad(beta, ((0, 0), (0, pad)))
    if use_bf16:
        w_t = w_t.astype(jnp.bfloat16)
    gb = jnp.stack([gamma.astype(jnp.float32), beta.astype(jnp.float32)], axis=1)
    return w_t, gb, c_out


def latent_linear_batched_prepared(x, w_t, gb, c_out, *, bblk=None):
    """Hot path: B independent LatentLinear instances in ONE pallas_call, B-blocked grid.

    x:   (B, N, c_in)
    w_t: (B, c_in, c_out_p), gb: (B, 2, c_out_p)  from prepare_latent_linear_params
    returns (B, N, c_out)
    """
    b, n, c_in = x.shape
    c_out_p = w_t.shape[2]
    out_dtype = x.dtype
    if w_t.dtype == jnp.bfloat16:
        x = x.astype(jnp.bfloat16)

    vmem_limit = _vmem_limit_bytes()
    if bblk is None:
        bblk = _pick_bblk(b, n, c_in, c_out_p, vmem_limit)
    grid_b = -(-b // bblk)
    b_pad = grid_b * bblk
    if b_pad != b:
        # TODO(synk): choosing B as a multiple of BBLK upstream avoids this pad pass.
        x = jnp.pad(x, ((0, b_pad - b), (0, 0), (0, 0)))
        w_t = jnp.pad(w_t, ((0, b_pad - b), (0, 0), (0, 0)))
        gb = jnp.pad(gb, ((0, b_pad - b), (0, 0), (0, 0)))

    cost = pl.CostEstimate(
        flops=2 * b_pad * n * c_in * c_out_p + 6 * b_pad * n * c_out_p,
        transcendentals=b_pad * c_out_p,  # rsqrt per feature per instance
        bytes_accessed=(x.dtype.itemsize * b_pad * n * c_in
                        + w_t.dtype.itemsize * b_pad * c_in * c_out_p
                        + 4 * b_pad * (2 * c_out_p + n * c_out_p)),
    )

    out = pl.pallas_call(
        _latent_linear_kernel,
        out_shape=jax.ShapeDtypeStruct((b_pad, n, c_out_p), out_dtype),
        grid=(grid_b,),
        in_specs=[
            pl.BlockSpec((bblk, n, c_in), lambda i: (i, 0, 0)),
            pl.BlockSpec((bblk, c_in, c_out_p), lambda i: (i, 0, 0)),
            pl.BlockSpec((bblk, 2, c_out_p), lambda i: (i, 0, 0)),
        ],
        out_specs=pl.BlockSpec((bblk, n, c_out_p), lambda i: (i, 0, 0)),
        compiler_params=pltpu.CompilerParams(
            # Instance-block axis is embarrassingly parallel -> shards across v7x's 2 TCs.
            dimension_semantics=("parallel",),
            vmem_limit_bytes=vmem_limit,
        ),
        cost_estimate=cost,
    )(x, w_t, gb)

    if b_pad != b:
        out = out[:b]
    return out[:, :, :c_out] if c_out_p != c_out else out


def latent_linear_batched(x, weight, gamma, beta, *, use_bf16=False):
    """Convenience wrapper: prep + hot path in one call (prep should be hoisted in real use)."""
    w_t, gb, c_out = prepare_latent_linear_params(weight, gamma, beta, use_bf16=use_bf16)
    return latent_linear_batched_prepared(x, w_t, gb, c_out)


def latent_linear(x, weight, gamma, beta):
    """Single-instance wrapper matching the original module: x (N, c_in) -> (N, c_out)."""
    return latent_linear_batched(x[None], weight[None], gamma[None], beta[None])[0]


def latent_linear_ref(x, weight, gamma, beta):
    """Pure-JAX reference mirroring the PyTorch forward (training-mode BN, biased variance)."""
    h = jnp.maximum(x @ weight.T, 0.0)
    mean = jnp.mean(h, axis=0, keepdims=True)
    var = jnp.mean((h - mean) ** 2, axis=0, keepdims=True)
    return (h - mean) * lax.rsqrt(var + BN_EPS) * gamma[None, :] + beta[None, :]


if __name__ == "__main__":
    key = jax.random.PRNGKey(0)
    k_x, k_w, k_g, k_b = jax.random.split(key, 4)

    B, N, C_IN, C_OUT = 4, 8, 32, 64

    x = jax.random.normal(k_x, (B, N, C_IN), dtype=jnp.float32)
    # Deterministic synthetic parameters (shapes match nn.Linear / nn.BatchNorm1d).
    weight = jax.random.normal(k_w, (B, C_OUT, C_IN), dtype=jnp.float32) * (1.0 / jnp.sqrt(C_IN))
    gamma = 1.0 + 0.1 * jax.random.normal(k_g, (B, C_OUT), dtype=jnp.float32)
    beta = 0.1 * jax.random.normal(k_b, (B, C_OUT), dtype=jnp.float32)

    ref_b = jax.vmap(latent_linear_ref)(x, weight, gamma, beta)

    # One-time parameter prep (transpose + lane-pad + gamma/beta packing), then the
    # batched hot-path call: all B instances in one pallas_call, B-blocked grid.
    w_t, gb, c_out = prepare_latent_linear_params(weight, gamma, beta)
    out_b = jax.block_until_ready(latent_linear_batched_prepared(x, w_t, gb, c_out))
    assert out_b.shape == (B, N, C_OUT)
    assert jnp.allclose(out_b, ref_b, atol=1e-4, rtol=1e-4), float(jnp.max(jnp.abs(out_b - ref_b)))

    # Single-instance path (original module call signature).
    out_1 = jax.block_until_ready(latent_linear(x[0], weight[0], gamma[0], beta[0]))
    assert out_1.shape == (N, C_OUT)
    assert jnp.allclose(out_1, ref_b[0], atol=1e-4, rtol=1e-4), float(jnp.max(jnp.abs(out_1 - ref_b[0])))

    print("KERNEL_OK")
</pallas_src>

<mosaic_0001>
module attributes {stable_mosaic.version = 11 : i64} {
  func.func @_latent_linear_kernel(%arg0: i32, %arg1: memref<2x8x32xf32, #tpu.memory_space<vmem>>, %arg2: memref<2x32x128xf32, #tpu.memory_space<vmem>>, %arg3: memref<2x2x128xf32, #tpu.memory_space<vmem>>, %arg4: memref<2x8x128xf32, #tpu.memory_space<vmem>>) attributes {dimension_semantics = [#tpu.dimension_semantics<parallel>], iteration_bounds = array<i64: 2>, scalar_prefetch = 0 : i64, scratch_operands = 0 : i64, tpu.core_type = #tpu.core_type<tc>, window_params = [{transform_indices = @transform_0, window_bounds = array<i64: 2, 8, 32>}, {transform_indices = @transform_1, window_bounds = array<i64: 2, 32, 128>}, {transform_indices = @transform_2, window_bounds = array<i64: 2, 2, 128>}, {transform_indices = @transform_3, window_bounds = array<i64: 2, 8, 128>}]} {
    %c0 = arith.constant 0 : index
    %c0_0 = arith.constant 0 : index
    %c0_1 = arith.constant 0 : index
    %0 = vector.load %arg1[%c0, %c0_0, %c0_1] : memref<2x8x32xf32, #tpu.memory_space<vmem>>, vector<2x8x32xf32>
    %c0_2 = arith.constant 0 : index
    %c0_3 = arith.constant 0 : index
    %c0_4 = arith.constant 0 : index
    %1 = vector.load %arg2[%c0_2, %c0_3, %c0_4] : memref<2x32x128xf32, #tpu.memory_space<vmem>>, vector<2x32x128xf32>
    %cst = arith.constant dense<0.000000e+00> : vector<2x8x128xf32>
    %2 = tpu.matmul %0, %1, %cst {dimension_numbers = #tpu.dot_dimension_numbers<[2], [1], [1], [2], [0, 0, 0, 1, 1, 2], [0], [0]>} : vector<2x8x32xf32>, vector<2x32x128xf32>, vector<2x8x128xf32> -> vector<2x8x128xf32>
    %cst_5 = arith.constant 0.000000e+00 : f32
    %3 = vector.broadcast %cst_5 : f32 to vector<2x8x128xf32>
    %4 = arith.maximumf %2, %3 : vector<2x8x128xf32>
    %cst_6 = arith.constant dense<0.000000e+00> : vector<2x128xf32>
    %5 = vector.multi_reduction <add>, %4, %cst_6 [1] : vector<2x8x128xf32> to vector<2x128xf32>
    %6 = vector.shape_cast %5 : vector<2x128xf32> to vector<2x1x128xf32>
    %cst_7 = arith.constant 1.250000e-01 : f32
    %7 = vector.broadcast %cst_7 : f32 to vector<2x1x128xf32>
    %8 = arith.mulf %6, %7 : vector<2x1x128xf32>
    %9 = vector.broadcast %8 : vector<2x1x128xf32> to vector<2x8x128xf32>
    %10 = arith.subf %4, %9 : vector<2x8x128xf32>
    %11 = arith.mulf %10, %10 : vector<2x8x128xf32>
    %cst_8 = arith.constant dense<0.000000e+00> : vector<2x128xf32>
    %12 = vector.multi_reduction <add>, %11, %cst_8 [1] : vector<2x8x128xf32> to vector<2x128xf32>
    %13 = vector.shape_cast %12 : vector<2x128xf32> to vector<2x1x128xf32>
    %cst_9 = arith.constant 1.250000e-01 : f32
    %14 = vector.broadcast %cst_9 : f32 to vector<2x1x128xf32>
    %15 = arith.mulf %13, %14 : vector<2x1x128xf32>
    %cst_10 = arith.constant 9.99999974E-6 : f32
    %16 = vector.broadcast %cst_10 : f32 to vector<2x1x128xf32>
    %17 = arith.addf %15, %16 : vector<2x1x128xf32>
    %18 = math.rsqrt %17 : vector<2x1x128xf32>
    %c0_11 = arith.constant 0 : index
    %c0_12 = arith.constant 0 : index
    %c0_13 = arith.constant 0 : index
    %19 = vector.load %arg3[%c0_11, %c0_12, %c0_13] : memref<2x2x128xf32, #tpu.memory_space<vmem>>, vector<2x1x128xf32>
    %c0_14 = arith.constant 0 : index
    %c1 = arith.constant 1 : index
    %c0_15 = arith.constant 0 : index
    %20 = vector.load %arg3[%c0_14, %c1, %c0_15] : memref<2x2x128xf32, #tpu.memory_space<vmem>>, vector<2x1x128xf32>
    %21 = arith.mulf %18, %19 : vector<2x1x128xf32>
    %22 = vector.broadcast %21 : vector<2x1x128xf32> to vector<2x8x128xf32>
    %23 = arith.mulf %10, %22 : vector<2x8x128xf32>
    %24 = vector.broadcast %20 : vector<2x1x128xf32> to vector<2x8x128xf32>
    %25 = arith.addf %23, %24 : vector<2x8x128xf32>
    %c0_16 = arith.constant 0 : index
    %c0_17 = arith.constant 0 : index
    %c0_18 = arith.constant 0 : index
    %26 = vector.load %arg4[%c0_16, %c0_17, %c0_18] : memref<2x8x128xf32, #tpu.memory_space<vmem>>, vector<2x8x128xf32>
    tpu.vector_store %arg4[%c0_16, %c0_17, %c0_18], %25 {strides = array<i32>} : memref<2x8x128xf32, #tpu.memory_space<vmem>>, vector<2x8x128xf32>,
    return
  }
  func.func @transform_0(%arg0: i32) -> (i32, i32, i32) {
    %c0_i32 = arith.constant 0 : i32
    %c0_i32_0 = arith.constant 0 : i32
    %c0_i32_1 = arith.constant 0 : i32
    return %arg0, %c0_i32, %c0_i32_0 : i32, i32, i32
  }
  func.func @transform_1(%arg0: i32) -> (i32, i32, i32) {
    %c0_i32 = arith.constant 0 : i32
    %c0_i32_0 = arith.constant 0 : i32
    %c0_i32_1 = arith.constant 0 : i32
    return %arg0, %c0_i32, %c0_i32_0 : i32, i32, i32
  }
  func.func @transform_2(%arg0: i32) -> (i32, i32, i32) {
    %c0_i32 = arith.constant 0 : i32
    %c0_i32_0 = arith.constant 0 : i32
    %c0_i32_1 = arith.constant 0 : i32
    return %arg0, %c0_i32, %c0_i32_0 : i32, i32, i32
  }
  func.func @transform_3(%arg0: i32) -> (i32, i32, i32) {
    %c0_i32 = arith.constant 0 : i32
    %c0_i32_0 = arith.constant 0 : i32
    %c0_i32_1 = arith.constant 0 : i32
    return %arg0, %c0_i32, %c0_i32_0 : i32, i32, i32
  }
}

</mosaic_0001>

<bundles_post_ra>
// kernel: tpu_custom_call.1
= control target key start
LH: loop header
LB: loop body
LE: loop exit
PB: predicated region body
PF: predicated region fallthrough
CT: control target
= control target key end

     0   :  { %s1016_s0 = inlined_call_operand.hbm [shape: f32[4,8,32], index: 0, kind: input, shape index: {}]   ;;  %s1017_s1 = inlined_call_operand.hbm [shape: f32[4,32,128], index: 1, kind: input, shape index: {}]   ;;  %s1018_s2 = inlined_call_operand.hbm [shape: f32[4,2,128], index: 2, kind: input, shape index: {}]   ;;  %s1019_s3 = inlined_call_operand.hbm [shape: f32[4,8,128], index: 3, kind: output, shape index: {}]  }
   0x1   :  { %1022 = sst [smem:[#allocation13_spill]] %s1017_s1 }
   0x2   :  { %8 = vsyncpa [#allocation3], 0 }
   0x3   :  { %10 = vsyncpa [#allocation3 + $0x1], 0 }
   0x4   :  { %11 = vsyncpa [#allocation6], 0 }
   0x5   :  { %13 = vsyncpa [#allocation6 + $0x1], 0 }
   0x6   :  { %14 = vsyncpa [#allocation4], 0 }
   0x7   :  { %16 = vsyncpa [#allocation4 + $0x1], 0  ;;  %s824_s12 = smov 0   ;;  %s826_s13 = smov 0  }
   0x8   :  { %s828_s14 = smov 0   ;;  %s830_s15 = smov 0  }
   0x9 LB: > { %s845_s16 = sadd.s32 4294967295, %s796_s15   ;;  %s538_s17 = sadd.s32 4294967294, %s796_s15   ;;  %s796_s15 = sphi %s830_s15, %s1036_s15   ;;  %s792_s14 = sphi %s828_s14, %s1035_s14   ;;  %s788_s13 = sphi %s826_s13, %s1034_s13   ;;  %s784_s12 = sphi %s824_s12, %s1033_s12  }
   0xa   : > { %s849_s18 = sadd.s32 1, %s796_s15   ;;  %s29_s19 = sadd.s32 1, %s792_s14 }
   0xb   : > { %s26_s20 = ssub.s32 %s796_s15, %s849_s18  ;;  %p36_p0 = scmp.ne.s32.totalorder %s792_s14, %s788_s13 }
   0xc   : > { %p27_p1 = scmp.eq.s32.totalorder %s26_s20, 0  ;;  %p37_p2 = scmp.eq.s32.totalorder %s796_s15, 0 }
   0xd   : > { %p42_p3 = scmp.ne.s32.totalorder %s788_s13, %s784_s12  ;;  %p43_p4 = scmp.eq.s32.totalorder %s845_s16, 0 }
   0xe   : > { %s861_s21 = scalar_select %p27_p1, %s792_s14, %s29_s19  }
   0xf   : > { %p38_p5 = por %p37_p2, %p36_p0  ;;  %p863_p6 = por %p43_p4, %p42_p3 }
  0x10   : > { %1023 = sst [smem:[#allocation12_spill]] %s861_s21  ;;  %p118_p7 = scmp.eq.s32.totalorder %s845_s16, 1 }
  0x11   : > { %p124_p8 = scmp.eq.s32.totalorder %s538_s17, 1  ;;  %p540_p9 = scmp.ge.s32.totalorder %s796_s15, 2 }
  0x12   : > { %p590_p10 = scmp.lt.s32.totalorder %s796_s15, 2  ;;  %p870_p11 = por %p118_p7, %p36_p0 }
  0x13   : > { %p874_p12 = por %p124_p8, %p42_p3  ;;  %s879_s25 = sand.u32 1, %s792_s14  }
  0x14   : > { %p881_p13 = pnand %p590_p10, %p38_p5  ;;  %s166_s27 = sand.u32 1, %s796_s15  }
  0x15   : > { %s544_s28 = sshll.u32 %s879_s25, 6  ;;  %s565_s29 = sshll.u32 %s796_s15, 6 }
  0x16   : > { %s1028_s1 = sld [smem:[#allocation13_spill]]  ;;  %s170_s6 = scalar_lea.vmem [#allocation5], %s544_s28 }
  0x17   : > { %s179_s7 = sshll.u32 %s170_s6, 4  ;;  %p551_p0 = scmp.ge.s32.totalorder %s796_s15, 1  ;;  %s180_s7 = int_to_ptr.vmem [resolvable:$true] %s179_s7 }
  0x18   : > { %s892_s9 = scalar_lea.sflag [#allocation6], %s166_s27  ;;  %p640_p2 = pneg %p881_p13 }
  0x1c   : > { %s176_s5 = scalar_lea.hbm %s1028_s1, %s565_s29  ;;  %s643_s20 = scalar_lea.hbm %s1028_s1, 128 }
  0x1d   : > { %s177_s8 = sshll.u32 %s176_s5, 4  ;;  %s178_s8 = int_to_ptr.hbm [resolvable:$true] %s177_s8 }
  0x1e   : > { %s636_s10 = sshra.s32 %s178_s8, 4  ;;  %s637_s10 = int_to_ptr.hbm [resolvable:$true] %s636_s10 }
  0x1f   : > { %s638_s11 = scalar_lea.hbm %s637_s10, 64  ;;  %p644_p5 = scmp.lt.s32.totalorder %s637_s10, %s1028_s1 }
  0x20   : > { %p639_p1 = scmp.ne.s32.totalorder %s637_s10, %s638_s11  ;;  %p645_p7 = scmp.lt.s32.totalorder %s643_s20, %s638_s11 }
  0x22   : > { %p641_p3 = pnand %p640_p2, %p639_p1  ;;  %p646_p8 = por %p645_p7, %p644_p5 }
  0x24   : > { %p642_p4 = pneg %p641_p3 }
  0x26   : > { %p647_p10 = pnand %p646_p8, %p642_p4 }
  0x28   : > { %650 = shalt.err (!%p647_p10)
}
  0x29   : > { %s1020_s27 = smov 128   ;;  %s1021_s30 = smov 8  }
  0x2a   : > { %582 = dma.hbm_to_vmem [thread:$0]  (!%p881_p13), %s178_s8, 1024, %s180_s7, %s892_s9, %s1020_s27, %s1020_s27, %s1021_s30  }
  0x2b   : > { %p209_p1 = scmp.lt.s32.totalorder %s796_s15, 3  ;;  %s541_s4 = sshll.u32 %s879_s25, 4 }
  0x2c   : > { %s563_s5 = sshll.u32 %s796_s15, 4  ;;  %s148_s19 = scalar_lea.vmem [#allocation2], %s541_s4 }
  0x2d   : > { %p916_p3 = pnand %p551_p0, %p209_p1  ;;  %s153_s17 = scalar_lea.hbm %s1016_s0, %s563_s5 }
  0x2e   : > { %s156_s20 = sshll.u32 %s148_s19, 4  ;;  %s154_s28 = sshll.u32 %s153_s17, 4  ;;  %s157_s20 = int_to_ptr.vmem [resolvable:$true] %s156_s20  ;;  %s155_s28 = int_to_ptr.hbm [resolvable:$true] %s154_s28 }
  0x2f   : > { %s548_s29 = sshll.u32 %s879_s25, 2  ;;  %s145_s7 = scalar_lea.sflag [#allocation3], %s879_s25 }
  0x30   : > { %s666_s8 = sshra.s32 %s155_s28, 4  ;;  %s673_s10 = scalar_lea.hbm %s1016_s0, 32  ;;  %s667_s8 = int_to_ptr.hbm [resolvable:$true] %s666_s8 }
  0x31   : > { %s668_s27 = scalar_lea.hbm %s667_s8, 16  ;;  %p674_p7 = scmp.lt.s32.totalorder %s667_s8, %s1016_s0 }
  0x32   : > { %p669_p4 = scmp.ne.s32.totalorder %s667_s8, %s668_s27  ;;  %p675_p8 = scmp.lt.s32.totalorder %s673_s10, %s668_s27 }
  0x34   : > { %p671_p0 = pnand %p669_p4, %p640_p2  ;;  %p676_p10 = por %p675_p8, %p674_p7 }
  0x36   : > { %p672_p5 = pneg %p671_p0 }
  0x38   : > { %p677_p1 = pnand %p676_p10, %p672_p5 }
  0x3a   : > { %680 = shalt.err (!%p677_p1)
}
  0x3b   : > { %s1030_s25 = smov 8   ;;  %s1031_s11 = smov 128  }
  0x3c   : > { %579 = dma.hbm_to_vmem [thread:$0]  (!%p881_p13), %s155_s28, 256, %s157_s20, %s145_s7, %s1031_s11, %s1031_s11, %s1030_s25  }
  0x3d   : > { %s566_s17 = sshll.u32 %s796_s15, 2  ;;  %s193_s21 = scalar_lea.vmem [#allocation7], %s548_s29 }
  0x3e   : > { %s198_s30 = scalar_lea.hbm %s1018_s2, %s566_s17  ;;  %s201_s5 = sshll.u32 %s193_s21, 4  ;;  %s202_s5 = int_to_ptr.vmem [resolvable:$true] %s201_s5 }
  0x3f   : > { %s199_s8 = sshll.u32 %s198_s30, 4  ;;  %s703_s28 = scalar_lea.hbm %s1018_s2, 8  ;;  %s200_s8 = int_to_ptr.hbm [resolvable:$true] %s199_s8 }
  0x40   : > { %s696_s27 = sshra.s32 %s200_s8, 4  ;;  %s697_s27 = int_to_ptr.hbm [resolvable:$true] %s696_s27 }
  0x41   : > { %s698_s10 = scalar_lea.hbm %s697_s27, 4  ;;  %p704_p7 = scmp.lt.s32.totalorder %s697_s27, %s1018_s2 }
  0x42   : > { %p699_p4 = scmp.ne.s32.totalorder %s697_s27, %s698_s10  ;;  %p705_p8 = scmp.lt.s32.totalorder %s703_s28, %s698_s10 }
  0x44   : > { %p701_p0 = pnand %p699_p4, %p640_p2  ;;  %p706_p10 = por %p705_p8, %p704_p7 }
  0x46   : > { %p702_p5 = pneg %p701_p0 }
  0x48   : > { %p707_p1 = pnand %p706_p10, %p702_p5 }
  0x4a   : > { %710 = shalt.err (!%p707_p1)
}
  0x4b   : > { %s800_s21 = smov 32   ;;  %s801_s29 = smov 2  }
  0x4c   : > { %585 = dma.hbm_to_vmem [thread:$0]  (!%p881_p13), %s200_s8, 64, %s202_s5, %s892_s9, %s800_s21, %s800_s21, %s801_s29  }
  0x4d   : > { %213 = sbr.rel (%p916_p3) target bundleno = 287 (0x11f), region = 32  ;;  %s958_s11 = sand.u32 (!%p916_p3), 1, %s788_s13  }
  0x4e   : > { %s552_s17 = sshll.u32 (!%p916_p3), %s958_s11, 4  ;;  %s216_s19 = scalar_lea.sflag (!%p916_p3), [#allocation3], %s958_s11 }
  0x4f   : > { %s219_s1 = scalar_lea.vmem (!%p916_p3), [#allocation2], %s552_s17 }
  0x52   : > { %771 = dma.done.wait (%p863_p6), %s216_s19, 256  }
  0x53   : > { %773 = vsyncadd (%p863_p6), %s216_s19, 4294967040  ;;  %s225_s26 = sand.u32 1, %s845_s16   ;;  %s553_s9 = sshll.u32 %s958_s11, 6 }
  0x54   : > { %s226_s6 = scalar_lea.sflag [#allocation6], %s225_s26  ;;  %s229_s30 = scalar_lea.vmem [#allocation5], %s553_s9 }
  0x55   : > { %775 = dma.done.wait (%p863_p6), %s226_s6, 1088  }
  0x56   : > { %777 = vsyncadd (%p863_p6), %s226_s6, 4294966208  ;;  %s554_s5 = sshll.u32 %s958_s11, 2  ;;  %v282_v0 = vld [vmem:[%s229_s30 + $0x18] sm:$0xff]  ;;  %v281_v2 = vld [vmem:[%s229_s30 + $0x10] sm:$0xff]  ;;  %vm287_vm0 = vcmask 261120   ;;  %s567_s22 = sshll.u32 %s845_s16, 4 }
  0x57   : > { %v286_v1 = vld [vmem:[%s229_s30 + $0x38] sm:$0xff]  ;;  %303 = vmatpush.msra.mxu0 %v282_v0  ;;  %v285_v3 = vld [vmem:[%s229_s30 + $0x30] sm:$0xff]  ;;  %v280_v4 = vld [vmem:[%s229_s30 + $0x8] sm:$0xff]  ;;  %s975_s8 = scalar_lea.vmem [#allocation7], %s554_s5  ;;  %s418_s4 = scalar_lea.hbm %s1019_s3, %s567_s22 }
  0x58   : > { %326 = vmatpush.msra.mxu1 %v286_v1  ;;  %v284_v5 = vld [vmem:[%s229_s30 + $0x28] sm:$0xff]  ;;  %v279_v6 = vld [vmem:[%s229_s30] sm:$0xff]  ;;  %s272_s16 = scalar_lea.vmem [#allocation8], %s552_s17  ;;  %s421_s28 = sshll.u32 %s418_s4, 4  ;;  %s422_s28 = int_to_ptr.hbm [resolvable:$true] %s421_s28 }
  0x59   : > { %304 = vmatpush.msra.mxu0 %v281_v2  ;;  %v283_v7 = vld [vmem:[%s229_s30 + $0x20] sm:$0xff]  ;;  %v278_v9 = vld [vmem:[%s219_s1 + $0x8] sm:$0xff]  ;;  %s419_s20 = sshll.u32 %s272_s16, 4  ;;  %s407_s7 = scalar_lea.sflag [#allocation4], %s958_s11  ;;  %s420_s20 = int_to_ptr.vmem [resolvable:$true] %s419_s20 }
  0x5a   : > { %327 = vmatpush.msra.mxu1 %v285_v3  ;;  %v277_v8 = vld [vmem:[%s219_s1] sm:$0xff]  ;;  %s740_s25 = sshra.s32 %s422_s28, 4  ;;  %s746_s19 = scalar_lea.hbm %s1019_s3, 32  ;;  %s741_s25 = int_to_ptr.hbm [resolvable:$true] %s740_s25 }
  0x5b   : > { %305 = vmatpush.msra.mxu0 %v280_v4  ;;  %v390_v59 = vld [vmem:[%s975_s8] sm:$0x1]  ;;  %v391_v61 = vld [vmem:[%s975_s8 + $0x2] sm:$0x1]  ;;  %v630_v3 = vld [vmem:[%s975_s8 + $0x1] ss:$0 sm:$0xff]  ;;  %p747_p3 = scmp.lt.s32.totalorder %s741_s25, %s1019_s3 }
  0x5c   : > { %328 = vmatpush.msra.mxu1 %v284_v5  ;;  %v631_v5 = vld [vmem:[%s975_s8 + $0x3] ss:$0 sm:$0xff]  ;;  %s742_s21 = scalar_lea.hbm %s741_s25, 16 }
  0x5d   : > { %306 = vmatpush.msra.mxu0 %v279_v6  ;;  %p743_p6 = scmp.ne.s32.totalorder %s741_s25, %s742_s21  ;;  %p748_p4 = scmp.lt.s32.totalorder %s746_s19, %s742_s21 }
  0x5e   : > { %329 = vmatpush.msra.mxu1 %v283_v7  ;;  %556 = vmatmul.msk.f32.vlgmr.msra.gmra.mxu0 %vm287_vm0, %v277_v8 }
  0x5f   : > { %557 = vmatmul.msk.f32.vlgmr.msra.gmra.mxu1 %vm287_vm0, %v278_v9  ;;  %p744_p13 = pnand %p743_p6, %p870_p11  ;;  %p749_p0 = por %p748_p4, %p747_p3 }
  0x61   : > { %p745_p2 = pneg %p744_p13 }
  0x63   : > { %p750_p5 = pnand %p749_p0, %p745_p2 }
  0xdb   : > { %v308_v10 = vpop.f32.mrf.mxu0 }
  0xdc   : > { %v331_v11 = vpop.f32.mrf.mxu1  ;;  %v334_v12 = vmax.f32 %v308_v10, 0.0 }
  0xdd   : > { %v335_v13 = vmax.f32 %v331_v11, 0.0 }
  0xde   : > { %v336_v14 = vrot.slane %v334_v12, 4 }
  0xdf   : > { %v342_v15 = vrot.slane %v335_v13, 4 }
  0xe0   : > { %v337_v16 = vadd.f32 %v336_v14, %v334_v12 }
  0xe1   : > { %v343_v17 = vadd.f32 %v342_v15, %v335_v13 }
  0xe2   : > { %v338_v18 = vrot.slane %v337_v16, 2 }
  0xe3   : > { %v344_v19 = vrot.slane %v343_v17, 2 }
  0xe4   : > { %v339_v20 = vadd.f32 %v338_v18, %v337_v16 }
  0xe5   : > { %v345_v21 = vadd.f32 %v344_v19, %v343_v17 }
  0xe6   : > { %v340_v22 = vrot.slane %v339_v20, 1 }
  0xe7   : > { %v346_v23 = vrot.slane %v345_v21, 1 }
  0xe8   : > { %v341_v24 = vadd.f32 %v340_v22, %v339_v20 }
  0xe9   : > { %v347_v25 = vadd.f32 %v346_v23, %v345_v21 }
  0xea   : > { %v348_v26 = vmul.f32 0.125, %v341_v24 }
  0xeb   : > { %v349_v27 = vmul.f32 0.125, %v347_v25 }
  0xec   : > { %v350_v28 = vsub.f32 %v334_v12, %v348_v26 }
  0xed   : > { %v351_v29 = vsub.f32 %v335_v13, %v349_v27 }
  0xee   : > { %v352_v30 = vmul.f32 %v350_v28, %v350_v28 }
  0xef   : > { %v353_v31 = vmul.f32 %v351_v29, %v351_v29 }
  0xf0   : > { %v354_v32 = vrot.slane %v352_v30, 4 }
  0xf1   : > { %v360_v33 = vrot.slane %v353_v31, 4 }
  0xf2   : > { %v355_v34 = vadd.f32 %v354_v32, %v352_v30 }
  0xf3   : > { %v361_v35 = vadd.f32 %v360_v33, %v353_v31 }
  0xf4   : > { %v356_v36 = vrot.slane %v355_v34, 2 }
  0xf5   : > { %v362_v37 = vrot.slane %v361_v35, 2 }
  0xf6   : > { %v357_v38 = vadd.f32 %v356_v36, %v355_v34 }
  0xf7   : > { %v363_v39 = vadd.f32 %v362_v37, %v361_v35 }
  0xf8   : > { %v358_v40 = vrot.slane %v357_v38, 1 }
  0xf9   : > { %v364_v41 = vrot.slane %v363_v39, 1 }
  0xfa   : > { %v359_v42 = vadd.f32 %v358_v40, %v357_v38 }
  0xfb   : > { %v365_v43 = vadd.f32 %v364_v41, %v363_v39 }
  0xfc   : > { %v366_v44 = vmul.f32 0.125, %v359_v42 }
  0xfd   : > { %v367_v45 = vmul.f32 0.125, %v365_v43 }
  0xfe   : > { %v368_v46 = vadd.f32 1e-05, %v366_v44 }
  0xff   : > { %v369_v47 = vadd.f32 1e-05, %v367_v45 }
 0x100   : > { %632 = vrsqrt.f32 %v368_v46  ;;  %vm376_vm3 = vweird.f32 %v368_v46 }
 0x101   : > { %634 = vrsqrt.f32 %v369_v47  ;;  %vm386_vm5 = vweird.f32 %v369_v47 }
 0x106   : > { %v633_v48 = vpop.eup %632 }
 0x107   : > { %v635_v49 = vpop.eup %634  ;;  %v371_v50 = vmul.f32 %v633_v48, %v368_v46  ;;  %vm377_vm1 = vweird.f32 %v633_v48 }
 0x108   : > { %v381_v51 = vmul.f32 %v635_v49, %v369_v47  ;;  %vm387_vm2 = vweird.f32 %v635_v49  ;;  %vm378_vm4 = vmor %vm376_vm3, %vm377_vm1 }
 0x109   : > { %v372_v52 = vmul.f32 %v633_v48, %v371_v50  ;;  %vm388_vm6 = vmor %vm386_vm5, %vm387_vm2 }
 0x10a   : > { %v382_v53 = vmul.f32 %v635_v49, %v381_v51 }
 0x10b   : > { %v373_v54 = vmul.f32 0.5, %v372_v52 }
 0x10c   : > { %v383_v55 = vmul.f32 0.5, %v382_v53 }
 0x10d   : > { %v374_v56 = vsub.f32 1.5, %v373_v54 }
 0x10e   : > { %v384_v57 = vsub.f32 1.5, %v383_v55 }
 0x10f   : > { %v375_v58 = vmul.f32 %v633_v48, %v374_v56 }
 0x110   : > { %v385_v60 = vmul.f32 %v635_v49, %v384_v57 }
 0x111   : > { %v379_v62 = vsel %vm378_vm4, %v633_v48, %v375_v58 }
 0x112   : > { %v394_v63 = vmul.f32 %v390_v59, %v379_v62  ;;  %v389_v0 = vsel %vm388_vm6, %v635_v49, %v385_v60 }
 0x113   : > { %v395_v1 = vmul.f32 %v391_v61, %v389_v0 }
 0x114   : > { %v396_v2 = vperm.slane %v394_v63, 0 }
 0x115   : > { %v397_v4 = vperm.slane %v395_v1, 0 }
 0x116   : > { %v398_v6 = vmul.f32 %v396_v2, %v350_v28 }
 0x117   : > { %v399_v7 = vmul.f32 %v397_v4, %v351_v29 }
 0x118   : > { %v402_v8 = vadd.f32 %v630_v3, %v398_v6 }
 0x119   : > { %v403_v9 = vadd.f32 %v631_v5, %v399_v7 }
 0x11a   : > { %404 = vst [vmem:[%s272_s16] sm:$0xff] %v402_v8 }
 0x11b   : > { %405 = vst [vmem:[%s272_s16 + $0x8] sm:$0xff] %v403_v9 }
 0x11c   : > { %753 = shalt.err (!%p750_p5)
}
 0x11d   : > { %s802_s11 = smov 128   ;;  %s803_s9 = smov 8  }
 0x11e   : > { %574 = dma.vmem_to_hbm [thread:$0]  (%p870_p11), %s420_s20, 256, %s422_s28, %s407_s7, %s802_s11, %s802_s11, %s803_s9  }
 0x11f PF: > { %s436_s6 = sand.u32 1, %s784_s12   ;;  %p587_p7 = pnand %p540_p9, %p874_p12 }
 0x120   : > { %s437_s30 = scalar_lea.sflag [#allocation4], %s436_s6 }
 0x121   : > { %p588_p8 = pneg %p587_p7 }
 0x123   : > { %779 = dma.done.wait (%p588_p8), %s437_s30, 256  }
 0x124   : > { %781 = vsyncadd (%p588_p8), %s437_s30, 4294967040  ;;  %s1032_s5 = sld [smem:[#allocation12_spill]]  ;;  %p19_p10 = scmp.ge.s32.totalorder %s849_s18, 4  }
 0x125   : > { %s1033_s12 = smov %s788_s13  ;;  %s1034_s13 = smov %s792_s14 }
 0x126   : > { %s1036_s15 = smov %s849_s18  ;;  %21 = sbr.rel (!%p19_p10) target bundleno = 9 (0x9), region = 101 }
 0x12a   : > { %s1035_s14 = smov %s1032_s5 }
 0x12b   :  { %443 = vsyncpa [#allocation3], 1 }
 0x12c   :  { %445 = vsyncpa [#allocation3 + $0x1], 1 }
 0x12d   :  { %446 = vsyncpa [#allocation6], 1 }
 0x12e   :  { %448 = vsyncpa [#allocation6 + $0x1], 1 }
 0x12f   :  { %449 = vsyncpa [#allocation4], 1 }
 0x130   :  { %451 = vsyncpa [#allocation4 + $0x1], 1 }

</bundles_post_ra>
